<compile_context>
chip_gen: v7x
topology: tpu7x:2x2x1
jax: 0.10.0
libtpu: 0.0.40
codegen_flags: <defaults>
</compile_context>

<pallas_src>
import jax
import jax.numpy as jnp
from jax.experimental import pallas as pl
from jax.experimental.pallas import tpu as pltpu

LANE = 128
SUBLANE = 8
NUM_SPLITS = 2                   # leading "parallel" axis: both TCs on v7x; no-op elsewhere
_TARGET_BLOCK_BYTES = 2 << 20    # ~2 MiB per input block at f32 (4096 rows x 128 lanes)


def _round_up(x, m):
    return ((x + m - 1) // m) * m


def _panns_loss_kernel(p_ref, t_ref, out_ref):
    """One (block_rows, 128) tile: sanitize, BCE terms, accumulate (8,128) partials."""
    i = pl.program_id(1)

    @pl.when(i == 0)
    def _():
        out_ref[...] = jnp.zeros_like(out_ref)

    p = p_ref[...].astype(jnp.float32)
    t = t_ref[...]                       # already float32 (target.float())

    # torch.where(isnan | isinf, 0, p)
    p = jnp.where(jnp.isnan(p) | jnp.isinf(p), jnp.zeros_like(p), p)

    # nn.BCELoss elementwise term with PyTorch's -100 clamp on the logs.
    log_p = jnp.maximum(jnp.log(p), jnp.float32(-100.0))
    log_1mp = jnp.maximum(jnp.log(1.0 - p), jnp.float32(-100.0))
    loss = -(t * log_p + (1.0 - t) * log_1mp)

    # Sublane/lane-preserving partial reduction: pure VPU adds across vregs,
    # no per-step XLU cross-lane reduce and no scalar/SMEM serialization.
    out_ref[...] += jnp.sum(loss.reshape(-1, SUBLANE, LANE), axis=0)


def panns_loss(clipwise_output, target):
    """Pallas implementation of PANNsLoss.forward.

    clipwise_output: (B, C) probabilities (any float dtype, may contain NaN/Inf),
                     or a dict with key 'clipwise_output' like the PyTorch module.
    target:          (B, C) array (any float/int dtype), cast to float32.
    Returns a scalar float32 (mean BCE).
    """
    if isinstance(clipwise_output, dict):
        clipwise_output = clipwise_output["clipwise_output"]

    p = jnp.ravel(clipwise_output)
    t = jnp.ravel(target).astype(jnp.float32)   # target.float()
    n = p.size

    # ---- lane-dense tiling of the flattened element stream ------------------
    rows = pl.cdiv(n, LANE)
    max_block_rows = max(SUBLANE, (_TARGET_BLOCK_BYTES // (LANE * 4)) // SUBLANE * SUBLANE)
    blocks_total = NUM_SPLITS * max(1, pl.cdiv(rows, NUM_SPLITS * max_block_rows))
    block_rows = _round_up(pl.cdiv(rows, blocks_total), SUBLANE)
    padded_rows = blocks_total * block_rows
    padded_n = padded_rows * LANE
    blocks_per_split = blocks_total // NUM_SPLITS

    # Padding with p=0, t=0 contributes exactly 0 loss:
    #   -(0 * (-100) + 1 * log(1 - 0)) = 0
    if padded_n != n:
        p = jnp.pad(p, (0, padded_n - n))
        t = jnp.pad(t, (0, padded_n - n))
    p2 = p.reshape(padded_rows, LANE)
    t2 = t.reshape(padded_rows, LANE)

    partials = pl.pallas_call(
        _panns_loss_kernel,
        out_shape=jax.ShapeDtypeStruct((NUM_SPLITS * SUBLANE, LANE), jnp.float32),
        grid_spec=pltpu.PrefetchScalarGridSpec(
            num_scalar_prefetch=0,
            grid=(NUM_SPLITS, blocks_per_split),
            in_specs=[
                pl.BlockSpec((block_rows, LANE),
                             lambda c, i: (c * blocks_per_split + i, 0)),
                pl.BlockSpec((block_rows, LANE),
                             lambda c, i: (c * blocks_per_split + i, 0)),
            ],
            # Per-split (8,128) partial-sum slab, resident across the reduction axis.
            out_specs=pl.BlockSpec((SUBLANE, LANE), lambda c, i: (c, 0)),
        ),
        compiler_params=pltpu.CompilerParams(
            dimension_semantics=("parallel", "arbitrary"),
            vmem_limit_bytes=32 << 20,   # 2 inputs x 2 bufs x <=2 MiB + slack; safe on v5e..v7x
        ),
    )(p2, t2)

    # Single cross-lane reduce + mean at the very end.
    return jnp.sum(partials) / jnp.float32(n)


def _reference_loss(p, t):
    """Plain-JAX reference mirroring torch semantics (silent sanity check)."""
    p = p.astype(jnp.float32)
    t = t.astype(jnp.float32)
    p = jnp.where(jnp.isnan(p) | jnp.isinf(p), 0.0, p)
    lp = jnp.maximum(jnp.log(p), -100.0)
    l1p = jnp.maximum(jnp.log(1.0 - p), -100.0)
    return jnp.mean(-(t * lp + (1.0 - t) * l1p))


if __name__ == "__main__":
    key = jax.random.PRNGKey(0)
    k1, k2 = jax.random.split(key)

    # Small PANNs-like shapes: batch=16, num_classes=527 (AudioSet) — exercises the
    # lane-padding path (527 is not a multiple of 128).
    B, C = 16, 527
    logits = jax.random.normal(k1, (B, C), dtype=jnp.float32)
    probs = jax.nn.sigmoid(logits)
    # Exercise sanitization and the -100 log clamp.
    probs = probs.at[0, 0].set(jnp.nan)
    probs = probs.at[1, 5].set(jnp.inf)
    probs = probs.at[2, 7].set(-jnp.inf)
    probs = probs.at[3, 11].set(0.0)
    probs = probs.at[4, 13].set(1.0)
    target = (jax.random.uniform(k2, (B, C)) > 0.5).astype(jnp.float32)

    loss = jax.block_until_ready(panns_loss({"clipwise_output": probs}, target))
    ref = _reference_loss(probs, target)
    assert jnp.allclose(loss, ref, rtol=1e-5, atol=1e-5), (loss, ref)

    # bf16 probabilities (bandwidth-friendly path); math still in f32 in-kernel.
    probs_bf16 = probs.astype(jnp.bfloat16)
    loss_bf16 = jax.block_until_ready(panns_loss(probs_bf16, target))
    ref_bf16 = _reference_loss(probs_bf16.astype(jnp.float32), target)
    assert jnp.allclose(loss_bf16, ref_bf16, rtol=1e-4, atol=1e-4), (loss_bf16, ref_bf16)

    print("KERNEL_OK")
</pallas_src>

<mosaic_0001>
module attributes {stable_mosaic.version = 11 : i64} {
  func.func @_panns_loss_kernel(%arg0: i32, %arg1: i32, %arg2: memref<40x128xf32, #tpu.memory_space<vmem>>, %arg3: memref<40x128xf32, #tpu.memory_space<vmem>>, %arg4: memref<8x128xf32, #tpu.memory_space<vmem>>) attributes {dimension_semantics = [#tpu.dimension_semantics<parallel>, #tpu.dimension_semantics<arbitrary>], iteration_bounds = array<i64: 2, 1>, scalar_prefetch = 0 : i64, scratch_operands = 0 : i64, tpu.core_type = #tpu.core_type<tc>, window_params = [{transform_indices = @transform_0, window_bounds = array<i64: 40, 128>}, {transform_indices = @transform_1, window_bounds = array<i64: 40, 128>}, {transform_indices = @transform_2, window_bounds = array<i64: 8, 128>}]} {
    %c0_i32 = arith.constant 0 : i32
    %0 = arith.cmpi eq, %arg1, %c0_i32 : i32
    %1 = arith.extui %0 : i1 to i32
    %c0_i32_0 = arith.constant 0 : i32
    %2 = arith.cmpi ne, %1, %c0_i32_0 : i32
    scf.if %2 {
      %cst_15 = arith.constant 0.000000e+00 : f32
      %32 = vector.broadcast %cst_15 : f32 to vector<8x128xf32>
      %c0_16 = arith.constant 0 : index
      %c0_17 = arith.constant 0 : index
      %33 = vector.load %arg4[%c0_16, %c0_17] : memref<8x128xf32, #tpu.memory_space<vmem>>, vector<8x128xf32>
      tpu.vector_store %arg4[%c0_16, %c0_17], %32 {strides = array<i32>} : memref<8x128xf32, #tpu.memory_space<vmem>>, vector<8x128xf32>,
    } else {
    }
    %c0 = arith.constant 0 : index
    %c0_1 = arith.constant 0 : index
    %3 = vector.load %arg2[%c0, %c0_1] : memref<40x128xf32, #tpu.memory_space<vmem>>, vector<40x128xf32>
    %c0_2 = arith.constant 0 : index
    %c0_3 = arith.constant 0 : index
    %4 = vector.load %arg3[%c0_2, %c0_3] : memref<40x128xf32, #tpu.memory_space<vmem>>, vector<40x128xf32>
    %5 = arith.cmpf one, %3, %3 : vector<40x128xf32>
    %6 = math.absf %3 : vector<40x128xf32>
    %cst = arith.constant 0x7F800000 : f32
    %7 = vector.broadcast %cst : f32 to vector<40x128xf32>
    %8 = arith.cmpf oeq, %6, %7 : vector<40x128xf32>
    %9 = arith.ori %5, %8 : vector<40x128xi1>
    %cst_4 = arith.constant 0.000000e+00 : f32
    %10 = vector.broadcast %cst_4 : f32 to vector<40x128xf32>
    %11 = arith.select %9, %10, %3 : vector<40x128xi1>, vector<40x128xf32>
    %12 = math.log %11 : vector<40x128xf32>
    %cst_5 = arith.constant -1.000000e+02 : f32
    %13 = vector.broadcast %cst_5 : f32 to vector<40x128xf32>
    %14 = arith.maximumf %12, %13 : vector<40x128xf32>
    %cst_6 = arith.constant 1.000000e+00 : f32
    %15 = vector.broadcast %cst_6 : f32 to vector<40x128xf32>
    %16 = arith.subf %15, %11 : vector<40x128xf32>
    %17 = math.log %16 : vector<40x128xf32>
    %cst_7 = arith.constant -1.000000e+02 : f32
    %18 = vector.broadcast %cst_7 : f32 to vector<40x128xf32>
    %19 = arith.maximumf %17, %18 : vector<40x128xf32>
    %20 = arith.mulf %4, %14 : vector<40x128xf32>
    %cst_8 = arith.constant 1.000000e+00 : f32
    %21 = vector.broadcast %cst_8 : f32 to vector<40x128xf32>
    %22 = arith.subf %21, %4 : vector<40x128xf32>
    %23 = arith.mulf %22, %19 : vector<40x128xf32>
    %24 = arith.addf %20, %23 : vector<40x128xf32>
    %cst_9 = arith.constant 0.000000e+00 : f32
    %25 = vector.broadcast %cst_9 : f32 to vector<40x128xf32>
    %26 = arith.subf %25, %24 : vector<40x128xf32>
    %c0_10 = arith.constant 0 : index
    %c0_11 = arith.constant 0 : index
    %27 = vector.load %arg4[%c0_10, %c0_11] : memref<8x128xf32, #tpu.memory_space<vmem>>, vector<8x128xf32>
    %28 = vector.shape_cast %26 : vector<40x128xf32> to vector<5x8x128xf32>
    %cst_12 = arith.constant dense<0.000000e+00> : vector<8x128xf32>
    %29 = vector.multi_reduction <add>, %28, %cst_12 [0] : vector<5x8x128xf32> to vector<8x128xf32>
    %30 = arith.addf %27, %29 : vector<8x128xf32>
    %c0_13 = arith.constant 0 : index
    %c0_14 = arith.constant 0 : index
    %31 = vector.load %arg4[%c0_13, %c0_14] : memref<8x128xf32, #tpu.memory_space<vmem>>, vector<8x128xf32>
    tpu.vector_store %arg4[%c0_13, %c0_14], %30 {strides = array<i32>} : memref<8x128xf32, #tpu.memory_space<vmem>>, vector<8x128xf32>,
    return
  }
  func.func @transform_0(%arg0: i32, %arg1: i32) -> (i32, i32) {
    %c1_i32 = arith.constant 1 : i32
    %0 = arith.muli %arg0, %c1_i32 : i32
    %1 = arith.addi %0, %arg1 : i32
    %c0_i32 = arith.constant 0 : i32
    %c0_i32_0 = arith.constant 0 : i32
    return %1, %c0_i32 : i32, i32
  }
  func.func @transform_1(%arg0: i32, %arg1: i32) -> (i32, i32) {
    %c1_i32 = arith.constant 1 : i32
    %0 = arith.muli %arg0, %c1_i32 : i32
    %1 = arith.addi %0, %arg1 : i32
    %c0_i32 = arith.constant 0 : i32
    %c0_i32_0 = arith.constant 0 : i32
    return %1, %c0_i32 : i32, i32
  }
  func.func @transform_2(%arg0: i32, %arg1: i32) -> (i32, i32) {
    %c0_i32 = arith.constant 0 : i32
    %c0_i32_0 = arith.constant 0 : i32
    return %arg0, %c0_i32 : i32, i32
  }
}

</mosaic_0001>

<bundles_post_ra>
// kernel: tpu_custom_call.1
= control target key start
LH: loop header
LB: loop body
LE: loop exit
PB: predicated region body
PF: predicated region fallthrough
CT: control target
= control target key end

     0   :  { %7 = vsyncpa [#allocation3], 0  ;;  %s965_s0 = inlined_call_operand.hbm [shape: f32[80,128], index: 0, kind: input, shape index: {}]   ;;  %s966_s1 = inlined_call_operand.hbm [shape: f32[80,128], index: 1, kind: input, shape index: {}]   ;;  %s967_s2 = inlined_call_operand.hbm [shape: f32[16,128], index: 2, kind: output, shape index: {}]  }
   0x1   :  { %9 = vsyncpa [#allocation3 + $0x1], 0 }
   0x2   :  { %10 = vsyncpa [#allocation6], 0 }
   0x3   :  { %12 = vsyncpa [#allocation6 + $0x1], 0 }
   0x4   :  { %13 = vsyncpa [#allocation4], 0 }
   0x5   :  { %15 = vsyncpa [#allocation4 + $0x1], 0  ;;  %s723_s9 = smov 0   ;;  %s725_s10 = smov 0  }
   0x6   :  { %s727_s11 = smov 0   ;;  %s729_s12 = smov 0  }
   0x7   :  { %s731_s13 = smov 0   ;;  %s733_s14 = smov 0  }
   0x8 LB: > { %s448_s15 = sadd.s32 4294967295, %s701_s14   ;;  %s449_s16 = sadd.s32 4294967294, %s701_s14   ;;  %s701_s14 = sphi %s733_s14, %s21_s14   ;;  %s697_s13 = sphi %s731_s13, %s985_s13   ;;  %s693_s12 = sphi %s729_s12, %s984_s12   ;;  %s689_s11 = sphi %s727_s11, %s983_s11   ;;  %s685_s10 = sphi %s725_s10, %s982_s10   ;;  %s681_s9 = sphi %s723_s9, %s981_s9  }
   0x9   : > { %s33_s17 = sadd.s32 1, %s697_s13  ;;  %s42_s18 = sadd.s32 1, %s689_s11 }
   0xa   : > { %p35_p0 = scmp.ge.s32.totalorder %s33_s17, 2  ;;  %p49_p1 = scmp.ne.s32.totalorder %s689_s11, %s685_s10 }
   0xb   : > { %p50_p2 = scmp.eq.s32.totalorder %s701_s14, 0  ;;  %p55_p3 = scmp.ne.s32.totalorder %s685_s10, %s681_s9 }
   0xc   : > { %s987_s17 = smov (%p35_p0, %s33_s17), 0  ;;  %p56_p5 = scmp.eq.s32.totalorder %s448_s15, 0 }
   0xd   : > { %p764_p4 = por %p50_p2, %p49_p1  ;;  %s39_s20 = ssub.s32 %s697_s13, %s987_s17 }
   0xe   : > { %p107_p6 = scmp.eq.s32.totalorder %s448_s15, 1  ;;  %p40_p7 = scmp.eq.s32.totalorder %s39_s20, 0 }
   0xf   : > { %p770_p8 = por %p56_p5, %p55_p3  ;;  %p113_p10 = scmp.eq.s32.totalorder %s449_s16, 1 }
  0x10   : > { %p774_p9 = por %p107_p6, %p49_p1  ;;  %p482_p13 = scmp.lt.s32.totalorder %s701_s14, 2 }
  0x11   : > { %s971_s21 = scalar_select %p770_p8, 1, 0 }
  0x12   : > { %s972_s22 = scalar_select %p774_p9, 1, 0 }
  0x13   : > { %s779_s23 = scalar_select %p40_p7, %s689_s11, %s42_s18  }
  0x14   : > { %p781_p11 = por %p113_p10, %p55_p3  ;;  %s788_s25 = sand.u32 1, %s689_s11  }
  0x15   : > { %s462_s26 = smul.u32 40, %s788_s25  ;;  %p794_p0 = pnand %p482_p13, %p764_p4 }
  0x16   : > { %s973_s24 = scalar_select %p781_p11, 1, 0 }
  0x17   : > { %s460_s27 = smul.u32 640, %s697_s13  ;;  %s137_s4 = scalar_lea.vmem [#allocation2], %s462_s26 }
  0x18   : > { %s145_s5 = sshll.u32 %s137_s4, 4  ;;  %s134_s6 = scalar_lea.sflag [#allocation3], %s788_s25  ;;  %s807_s5 = int_to_ptr.vmem [resolvable:$true] %s145_s5 }
  0x19   : > { %s803_s3 = scalar_lea.hbm %s965_s0, %s460_s27  ;;  %p557_p3 = pneg %p794_p0 }
  0x1a   : > { %s555_s7 = scalar_lea.hbm %s803_s3, 640  ;;  %s560_s16 = scalar_lea.hbm %s965_s0, 1280 }
  0x1b   : > { %p556_p2 = scmp.ne.s32.totalorder %s803_s3, %s555_s7  ;;  %p561_p6 = scmp.lt.u32.totalorder %s803_s3, %s965_s0 }
  0x1c   : > { %p562_p7 = scmp.lt.u32.totalorder %s560_s16, %s555_s7  ;;  %p564_p13 = scmp.lt.u32.totalorder %s555_s7, %s803_s3 }
  0x1d   : > { %p558_p4 = pnand %p557_p3, %p556_p2 }
  0x1e   : > { %p563_p10 = por %p562_p7, %p561_p6 }
  0x1f   : > { %p559_p5 = pneg %p558_p4 }
  0x20   : > { %p565_p12 = por %p564_p13, %p563_p10 }
  0x22   : > { %p566_p1 = pnand %p565_p12, %p559_p5 }
  0x24   : > { %569 = shalt.err (!%p566_p1)
}
  0x25   : > { %s570_s20 = scalar_lea.vmem %s807_s5, 640  ;;  %s703_s29 = smov [#allocation2]  }
  0x26   : > { %p571_p2 = scmp.ne.s32.totalorder %s807_s5, %s570_s20  ;;  %s575_s30 = sshll.u32 %s703_s29, 4  ;;  %s576_s30 = int_to_ptr.vmem [resolvable:$false] %s575_s30 }
  0x27   : > { %s577_s4 = scalar_lea.vmem %s576_s30, 1280  ;;  %p578_p9 = scmp.lt.s32.totalorder %s807_s5, %s576_s30 }
  0x28   : > { %p573_p4 = pnand %p571_p2, %p557_p3  ;;  %p579_p6 = scmp.lt.s32.totalorder %s577_s4, %s570_s20 }
  0x2a   : > { %p574_p11 = pneg %p573_p4  ;;  %p580_p7 = por %p579_p6, %p578_p9 }
  0x2c   : > { %p581_p10 = pnand %p580_p7, %p574_p11 }
  0x2e   : > { %584 = shalt.err (!%p581_p10)
}
  0x2f   : > { %s704_s7 = smov 128   ;;  %s705_s8 = smov 8  }
  0x30   : > { %474 = dma.hbm_to_vmem [thread:$0]  (!%p794_p0), %s803_s3, 640, %s807_s5, %s134_s6, %s704_s7, %s704_s7, %s705_s8  }
  0x31   : > { %p175_p9 = scmp.lt.s32.totalorder %s701_s14, 3  ;;  %s847_s18 = scalar_lea.hbm %s966_s1, %s460_s27 }
  0x32   : > { %p975_p11 = scmp.ge.s32.totalorder %s701_s14, 1  ;;  %s159_s20 = scalar_lea.vmem [#allocation5], %s462_s26 }
  0x33   : > { %s167_s29 = sshll.u32 %s159_s20, 4  ;;  %s156_s3 = scalar_lea.sflag [#allocation6], %s788_s25  ;;  %s857_s29 = int_to_ptr.vmem [resolvable:$true] %s167_s29 }
  0x34   : > { %p851_p12 = pnand %p975_p11, %p175_p9  ;;  %s585_s5 = scalar_lea.hbm %s847_s18, 640 }
  0x35   : > { %p586_p1 = scmp.ne.s32.totalorder %s847_s18, %s585_s5  ;;  %s590_s30 = scalar_lea.hbm %s966_s1, 1280 }
  0x36   : > { %p591_p2 = scmp.lt.u32.totalorder %s847_s18, %s966_s1  ;;  %p592_p4 = scmp.lt.u32.totalorder %s590_s30, %s585_s5 }
  0x37   : > { %p588_p5 = pnand %p586_p1, %p557_p3  ;;  %p594_p7 = scmp.lt.u32.totalorder %s585_s5, %s847_s18 }
  0x38   : > { %p593_p6 = por %p592_p4, %p591_p2 }
  0x39   : > { %p589_p13 = pneg %p588_p5 }
  0x3a   : > { %p595_p10 = por %p594_p7, %p593_p6 }
  0x3c   : > { %p596_p9 = pnand %p595_p10, %p589_p13 }
  0x3e   : > { %599 = shalt.err (!%p596_p9)
}
  0x3f   : > { %s600_s26 = scalar_lea.vmem %s857_s29, 640  ;;  %s706_s16 = smov [#allocation5]  }
  0x40   : > { %p601_p11 = scmp.ne.s32.totalorder %s857_s29, %s600_s26  ;;  %s605_s20 = sshll.u32 %s706_s16, 4  ;;  %s606_s20 = int_to_ptr.vmem [resolvable:$false] %s605_s20 }
  0x41   : > { %s607_s27 = scalar_lea.vmem %s606_s20, 1280  ;;  %p608_p8 = scmp.lt.s32.totalorder %s857_s29, %s606_s20 }
  0x42   : > { %p603_p1 = pnand %p601_p11, %p557_p3  ;;  %p609_p2 = scmp.lt.s32.totalorder %s607_s27, %s600_s26 }
  0x44   : > { %p604_p5 = pneg %p603_p1  ;;  %p610_p4 = por %p609_p2, %p608_p8 }
  0x46   : > { %p611_p6 = pnand %p610_p4, %p604_p5 }
  0x48   : > { %614 = shalt.err (!%p611_p6)
}
  0x49   : > { %477 = dma.hbm_to_vmem [thread:$0]  (!%p794_p0), %s847_s18, 640, %s857_s29, %s156_s3, %s704_s7, %s704_s7, %s705_s8  }
  0x4a   : > { %179 = sbr.rel (%p851_p12) target bundleno = 139 (0x8b), region = 28  ;;  %s891_s5 = sand.u32 (!%p851_p12), 1, %s685_s10  }
  0x4b   : > { %s464_s6 = smul.u32 (!%p851_p12), 40, %s891_s5  ;;  %s182_s30 = scalar_lea.sflag (!%p851_p12), [#allocation3], %s891_s5 }
  0x4c   : > { %p977_p8 = scmp.ne.s32.totalorder (!%p851_p12), %s971_s21, 0 }
  0x4d   : > { %s185_s28 = scalar_lea.vmem (!%p851_p12), [#allocation2], %s464_s6 }
  0x51   : > { %668 = dma.done.wait (%p977_p8), %s182_s30, 640  }
  0x52   : > { %670 = vsyncadd (%p977_p8), %s182_s30, 4294966656  ;;  %s191_s25 = scalar_lea.sflag [#allocation6], %s891_s5  ;;  %s900_s7 = scalar_lea.vmem [#allocation5], %s464_s6 }
  0x53   : > { %672 = dma.done.wait (%p977_p8), %s191_s25, 640  }
  0x54   : > { %674 = vsyncadd (%p977_p8), %s191_s25, 4294966656  ;;  %v229_v0 = vld [vmem:[%s185_s28] sm:$0xff]  ;;  %v230_v1 = vld [vmem:[%s185_s28 + $0x8] sm:$0xff]  ;;  %s455_s21 = sshll.u32 %s891_s5, 3  ;;  %s457_s8 = sshll.u32 %s693_s12, 7 }
  0x55   : > { %v231_v2 = vld [vmem:[%s185_s28 + $0x10] sm:$0xff]  ;;  %v232_v3 = vld [vmem:[%s185_s28 + $0x18] sm:$0xff]  ;;  %v233_v4 = vld [vmem:[%s185_s28 + $0x20] sm:$0xff]  ;;  %vm239_vm0 = vcmp.ne.f32.partialorder %v229_v0, %v229_v0  ;;  %v244_v5 = vand.u32 2147483647, %v229_v0  ;;  %vm240_vm1 = vcmp.ne.f32.partialorder %v230_v1, %v230_v1  ;;  %s219_s18 = scalar_lea.vmem [#allocation7], %s455_s21  ;;  %s916_s4 = scalar_lea.hbm %s967_s2, %s457_s8 }
  0x56   : > { %v245_v6 = vand.u32 2147483647, %v230_v1  ;;  %vm241_vm2 = vcmp.ne.f32.partialorder %v231_v2, %v231_v2  ;;  %v246_v7 = vand.u32 2147483647, %v231_v2  ;;  %v247_v8 = vand.u32 2147483647, %v232_v3 }
  0x57   : > { %vm249_vm3 = vcmp.eq.f32.partialorder %v244_v5, inf  ;;  %vm242_vm4 = vcmp.ne.f32.partialorder %v232_v3, %v232_v3  ;;  %v248_v9 = vand.u32 2147483647, %v233_v4  ;;  %vm243_vm7 = vcmp.ne.f32.partialorder %v233_v4, %v233_v4  ;;  %v234_v26 = vld [vmem:[%s900_s7] sm:$0xff]  ;;  %v235_v27 = vld [vmem:[%s900_s7 + $0x8] sm:$0xff]  ;;  %v236_v30 = vld [vmem:[%s900_s7 + $0x10] sm:$0xff] }
  0x58   : > { %vm250_vm5 = vcmp.eq.f32.partialorder %v245_v6, inf  ;;  %vm254_vm6 = vmor %vm239_vm0, %vm249_vm3  ;;  %vm251_vm8 = vcmp.eq.f32.partialorder %v246_v7, inf  ;;  %vm252_vm9 = vcmp.eq.f32.partialorder %v247_v8, inf  ;;  %v237_v31 = vld [vmem:[%s900_s7 + $0x18] sm:$0xff]  ;;  %v238_v38 = vld [vmem:[%s900_s7 + $0x20] sm:$0xff]  ;;  %v304_v41 = vsub.f32 1.0, %v234_v26 }
  0x59   : > { %vm255_vm10 = vmor %vm240_vm1, %vm250_vm5  ;;  %v259_v10 = vsel %vm254_vm6, 0.0, %v229_v0  ;;  %vm253_vm11 = vcmp.eq.f32.partialorder %v248_v9, inf  ;;  %v305_v42 = vsub.f32 1.0, %v235_v27  ;;  %v306_v46 = vsub.f32 1.0, %v236_v30  ;;  %s345_s19 = sshll.u32 %s219_s18, 4  ;;  %s332_s15 = scalar_lea.sflag [#allocation4], %s891_s5  ;;  %s918_s19 = int_to_ptr.vmem [resolvable:$true] %s345_s19 }
  0x5a   : > { %vm256_vm12 = vmor %vm241_vm2, %vm251_vm8  ;;  %v260_v11 = vsel %vm255_vm10, 0.0, %v230_v1  ;;  %535 = vlog2.f32 %v259_v10  ;;  %v279_v13 = vsub.f32 1.0, %v259_v10  ;;  %v307_v47 = vsub.f32 1.0, %v237_v31  ;;  %s615_s26 = scalar_lea.vmem %s918_s19, 128  ;;  %p978_p3 = scmp.ne.s32.totalorder %s972_s22, 0 }
  0x5b   : > { %vm257_vm13 = vmor %vm242_vm4, %vm252_vm9  ;;  %v261_v12 = vsel %vm256_vm12, 0.0, %v231_v2  ;;  %537 = vlog2.f32 %v260_v11  ;;  %v280_v15 = vsub.f32 1.0, %v260_v11  ;;  %v308_v57 = vsub.f32 1.0, %v238_v38  ;;  %p616_p0 = scmp.ne.s32.totalorder %s918_s19, %s615_s26  ;;  %s707_s12 = smov [#allocation7]  }
  0x5c   : > { %vm258_vm14 = vmor %vm243_vm7, %vm253_vm11  ;;  %v262_v14 = vsel %vm257_vm13, 0.0, %v232_v3  ;;  %539 = vlog2.f32 %v261_v12  ;;  %v281_v17 = vsub.f32 1.0, %v261_v12  ;;  %s619_s16 = sshll.u32 %s707_s12, 4  ;;  %s620_s16 = int_to_ptr.vmem [resolvable:$false] %s619_s16 }
  0x5d   : > { %v263_v16 = vsel %vm258_vm14, 0.0, %v233_v4  ;;  %541 = vlog2.f32 %v262_v14  ;;  %v282_v18 = vsub.f32 1.0, %v262_v14  ;;  %p617_p12 = pnand %p616_p0, %p978_p3  ;;  %s621_s20 = scalar_lea.vmem %s620_s16, 256 }
  0x5e   : > { %543 = vlog2.f32 %v263_v16  ;;  %v283_v19 = vsub.f32 1.0, %v263_v16  ;;  %p622_p7 = scmp.lt.s32.totalorder %s918_s19, %s620_s16  ;;  %p623_p10 = scmp.lt.s32.totalorder %s621_s20, %s615_s26 }
  0x5f   : > { %545 = vlog2.f32 %v279_v13  ;;  %p618_p13 = pneg %p617_p12 }
  0x60   : > { %547 = vlog2.f32 %v280_v15  ;;  %p624_p9 = por %p623_p10, %p622_p7 }
  0x61   : > { %549 = vlog2.f32 %v281_v17 }
  0x62   : > { %551 = vlog2.f32 %v282_v18  ;;  %p625_p11 = pnand %p624_p9, %p618_p13 }
  0x63   : > { %553 = vlog2.f32 %v283_v19 }
  0x64   : > { %v536_v20 = vpop.eup %535 }
  0x65   : > { %v538_v21 = vpop.eup %537  ;;  %v265_v22 = vmul.f32 0.6931472, %v536_v20 }
  0x66   : > { %v540_v23 = vpop.eup %539  ;;  %v267_v24 = vmul.f32 0.6931472, %v538_v21 }
  0x67   : > { %v542_v25 = vpop.eup %541  ;;  %v269_v28 = vmul.f32 0.6931472, %v540_v23  ;;  %v274_v33 = vmax.f32 %v265_v22, -100.0 }
  0x68   : > { %v544_v29 = vpop.eup %543  ;;  %v271_v32 = vmul.f32 0.6931472, %v542_v25  ;;  %v275_v36 = vmax.f32 %v267_v24, -100.0 }
  0x69   : > { %v546_v34 = vpop.eup %545  ;;  %v273_v35 = vmul.f32 0.6931472, %v544_v29  ;;  %v276_v39 = vmax.f32 %v269_v28, -100.0  ;;  %v299_v52 = vmul.f32 %v274_v33, %v234_v26 }
  0x6a   : > { %v548_v37 = vpop.eup %547  ;;  %v285_v40 = vmul.f32 0.6931472, %v546_v34  ;;  %v277_v44 = vmax.f32 %v271_v32, -100.0  ;;  %v300_v56 = vmul.f32 %v275_v36, %v235_v27 }
  0x6b   : > { %v550_v43 = vpop.eup %549  ;;  %v287_v45 = vmul.f32 0.6931472, %v548_v37  ;;  %v278_v49 = vmax.f32 %v273_v35, -100.0  ;;  %v301_v60 = vmul.f32 %v276_v39, %v236_v30 }
  0x6c   : > { %v552_v48 = vpop.eup %551  ;;  %v289_v50 = vmul.f32 0.6931472, %v550_v43  ;;  %v294_v51 = vmax.f32 %v285_v40, -100.0  ;;  %v302_v63 = vmul.f32 %v277_v44, %v237_v31 }
  0x6d   : > { %v554_v53 = vpop.eup %553  ;;  %v291_v54 = vmul.f32 0.6931472, %v552_v48  ;;  %v295_v55 = vmax.f32 %v287_v45, -100.0  ;;  %v303_v2 = vmul.f32 %v278_v49, %v238_v38 }
  0x6e   : > { %v293_v58 = vmul.f32 0.6931472, %v554_v53  ;;  %v296_v59 = vmax.f32 %v289_v50, -100.0  ;;  %v309_v61 = vmul.f32 %v304_v41, %v294_v51 }
  0x6f   : > { %v297_v62 = vmax.f32 %v291_v54, -100.0  ;;  %v310_v0 = vmul.f32 %v305_v42, %v295_v55 }
  0x70   : > { %v298_v1 = vmax.f32 %v293_v58, -100.0  ;;  %v311_v3 = vmul.f32 %v306_v46, %v296_v59  ;;  %v314_v4 = vadd.f32 %v309_v61, %v299_v52 }
  0x71   : > { %v312_v5 = vmul.f32 %v307_v47, %v297_v62  ;;  %v315_v6 = vadd.f32 %v310_v0, %v300_v56 }
  0x72   : > { %v313_v7 = vmul.f32 %v308_v57, %v298_v1  ;;  %v316_v8 = vadd.f32 %v311_v3, %v301_v60  ;;  %v319_v9 = vsub.f32 0.0, %v314_v4 }
  0x73   : > { %v317_v10 = vadd.f32 %v312_v5, %v302_v63  ;;  %v320_v11 = vsub.f32 0.0, %v315_v6 }
  0x74   : > { %v318_v12 = vadd.f32 %v313_v7, %v303_v2  ;;  %v321_v13 = vsub.f32 0.0, %v316_v8 }
  0x75   : > { %v322_v14 = vsub.f32 0.0, %v317_v10  ;;  %v325_v15 = vadd.f32 %v320_v11, %v319_v9 }
  0x76   : > { %v323_v16 = vsub.f32 0.0, %v318_v12 }
  0x77   : > { %v326_v17 = vadd.f32 %v325_v15, %v321_v13 }
  0x79   : > { %v327_v18 = vadd.f32 %v326_v17, %v322_v14 }
  0x7b   : > { %v328_v19 = vadd.f32 %v327_v18, %v323_v16 }
  0x7d   : > { %330 = vst [vmem:[%s219_s18] sm:$0xff] %v328_v19 }
  0x7e   : > { %628 = shalt.err (!%p625_p11)
}
  0x7f   : > { %s629_s27 = scalar_lea.hbm %s916_s4, 128  ;;  %s633_s30 = scalar_lea.hbm %s967_s2, 256 }
  0x80   : > { %p630_p1 = scmp.ne.s32.totalorder %s916_s4, %s629_s27  ;;  %p634_p4 = scmp.lt.u32.totalorder %s916_s4, %s967_s2 }
  0x81   : > { %p635_p6 = scmp.lt.u32.totalorder %s633_s30, %s629_s27  ;;  %p637_p0 = scmp.lt.u32.totalorder %s629_s27, %s916_s4 }
  0x82   : > { %p631_p5 = pnand %p630_p1, %p978_p3 }
  0x83   : > { %p636_p8 = por %p635_p6, %p634_p4 }
  0x84   : > { %p632_p2 = pneg %p631_p5 }
  0x85   : > { %p638_p12 = por %p637_p0, %p636_p8 }
  0x87   : > { %p639_p13 = pnand %p638_p12, %p632_p2 }
  0x89   : > { %642 = shalt.err (!%p639_p13)
}
  0x8a   : > { %469 = dma.vmem_to_hbm [thread:$0]  (%p978_p3), %s918_s19, 128, %s916_s4, %s332_s15  }
  0x8b PF: > { %s357_s7 = sand.u32 1, %s681_s9   ;;  %p979_p7 = scmp.ne.s32.totalorder %s973_s24, 0 }
  0x8c   : > { %p980_p10 = scmp.ge.s32.totalorder %s701_s14, 2  ;;  %s358_s21 = scalar_lea.sflag [#allocation4], %s357_s7 }
  0x8e   : > { %p479_p9 = pnand %p980_p10, %p979_p7 }
  0x90   : > { %676 = dma.done.wait (!%p479_p9), %s358_s21, 128  }
  0x91   : > { %678 = vsyncadd (!%p479_p9), %s358_s21, 4294967168  ;;  %s21_s14 = sadd.s32 1, %s701_s14   ;;  %s981_s9 = smov %s685_s10 }
  0x92   : > { %p18_p11 = scmp.ge.s32.totalorder %s21_s14, 4   ;;  %s982_s10 = smov %s689_s11 }
  0x93   : > { %s983_s11 = smov %s779_s23  ;;  %s984_s12 = smov %s697_s13 }
  0x94   : > { %s985_s13 = smov %s987_s17  ;;  %20 = sbr.rel (!%p18_p11) target bundleno = 8 (0x8), region = 90 }
  0x9b   :  { %363 = vsyncpa [#allocation3], 1 }
  0x9c   :  { %365 = vsyncpa [#allocation3 + $0x1], 1 }
  0x9d   :  { %366 = vsyncpa [#allocation6], 1 }
  0x9e   :  { %368 = vsyncpa [#allocation6 + $0x1], 1 }
  0x9f   :  { %369 = vsyncpa [#allocation4], 1 }
  0xa0   :  { %371 = vsyncpa [#allocation4 + $0x1], 1 }

</bundles_post_ra>
